<compile_context>
chip_gen: v7x
topology: tpu7x:2x2x1
jax: 0.10.0
libtpu: 0.0.40
codegen_flags: <defaults>
</compile_context>

<pallas_src>
import jax
import jax.numpy as jnp
from jax.experimental import pallas as pl
from jax.experimental.pallas import tpu as pltpu

# deterministic parameter init (from the module's source constants)
MEAN = [x / 255 for x in [129.3, 124.1, 112.4]]
STD = [x / 255 for x in [68.2, 65.4, 70.4]]

# ~4 MiB of f32 per block; with double-buffered in+out that is ~16 MiB resident,
# made safe everywhere by the explicit vmem_limit_bytes below.
_TARGET_BLOCK_ELEMS = 1 << 20
_MIN_GRID_STEPS = 4


def _normalize_kernel(x_ref, scale_ref, bias_ref, o_ref):
    # x_ref / o_ref: (TR, TC) tile; scale_ref / bias_ref: (TR, 1) per-row params.
    # Folded affine: (x - mean) / std == x * (1/std) + (-mean/std).
    o_ref[...] = x_ref[...] * scale_ref[...] + bias_ref[...]


def _cdiv(a, b):
    return -(-a // b)


def _round_down(v, m):
    return (v // m) * m


def _round_up(v, m):
    return _cdiv(v, m) * m


def _choose_tiles(rows, cols, target_elems=_TARGET_BLOCK_ELEMS,
                  min_steps=_MIN_GRID_STEPS):
    # --- lane (last) dim -----------------------------------------------------
    if 8 * cols <= target_elems or cols <= 128:
        # Full-width band: every block is one fully contiguous HBM burst.
        tc = cols
    else:
        # An 8-row full-width band would blow the budget: tile cols to a
        # 128-multiple (trailing partial block is padded/masked -> legal).
        tc = max(128, _round_down(target_elems // 8, 128))
        if tc >= cols:
            tc = cols

    # --- sublane (second-last) dim ------------------------------------------
    tr = max(8, _round_down(target_elems // tc, 8))
    if tr >= rows:
        tr = rows  # full extent is always legal

    # --- avoid a degenerate grid (keeps DMA overlap + megacore sharding) -----
    n_steps = _cdiv(rows, tr) * _cdiv(cols, tc)
    if n_steps < min_steps and rows * cols >= min_steps * 8 * 128:
        col_blocks = _cdiv(cols, tc)
        want_row_blocks = _cdiv(min_steps, col_blocks)
        tr_split = _round_up(_cdiv(rows, want_row_blocks), 8)
        if tr_split < rows:
            tr = tr_split
        elif cols >= min_steps * 128:
            tc_split = _round_up(_cdiv(cols, min_steps), 128)
            if tc_split < cols:
                tc = tc_split
    return tr, tc


def normalize_layer(x, mean, std):
    """x: (N, C, H, W); mean/std: (C,). Returns (x - mean[c]) / std[c]."""
    N, C, H, W = x.shape
    rows, cols = N * C, H * W

    # Lane-dense 2-D view (free reshape: NCHW is contiguous in this order).
    x2 = x.reshape(rows, cols)

    # Per-row (row = n*C + c) folded-affine columns; tiny one-time compute.
    inv_std = (1.0 / std).astype(x.dtype)                          # (C,)
    neg_mean_over_std = (-mean * inv_std).astype(x.dtype)          # (C,)
    scale_rows = jnp.tile(inv_std, N)[:, None]                     # (rows, 1)
    bias_rows = jnp.tile(neg_mean_over_std, N)[:, None]            # (rows, 1)

    tr, tc = _choose_tiles(rows, cols)
    grid = (pl.cdiv(rows, tr), pl.cdiv(cols, tc))

    # Explicit scoped-VMEM budget: double-buffered (in + out) blocks plus the
    # (tr, 1) param buffers (padded to 128 lanes in VMEM), plus slack.
    dtype_bytes = jnp.dtype(x.dtype).itemsize
    block_bytes = tr * tc * dtype_bytes
    param_bytes = tr * 128 * dtype_bytes
    vmem_bytes = 2 * (2 * block_bytes + 2 * param_bytes) + (1 << 20)
    vmem_bytes = min(max(vmem_bytes, 1 << 20), 64 << 20)

    out2 = pl.pallas_call(
        _normalize_kernel,
        out_shape=jax.ShapeDtypeStruct((rows, cols), x.dtype),
        grid=grid,
        in_specs=[
            pl.BlockSpec((tr, tc), lambda i, j: (i, j)),  # x tile
            pl.BlockSpec((tr, 1), lambda i, j: (i, 0)),   # per-row 1/std
            pl.BlockSpec((tr, 1), lambda i, j: (i, 0)),   # per-row -mean/std
        ],
        out_specs=pl.BlockSpec((tr, tc), lambda i, j: (i, j)),
        compiler_params=pltpu.CompilerParams(
            dimension_semantics=("parallel", "parallel"),
            vmem_limit_bytes=int(vmem_bytes),
        ),
    )(x2, scale_rows, bias_rows)

    return out2.reshape(N, C, H, W)


def _reference(x, mean, std):
    return (x - mean[None, :, None, None]) / std[None, :, None, None]


if __name__ == "__main__":
    key = jax.random.PRNGKey(0)
    mean = jnp.asarray(MEAN, dtype=jnp.float32)  # (C,) = (3,)
    std = jnp.asarray(STD, dtype=jnp.float32)    # (C,) = (3,)

    k1, k2 = jax.random.split(key)

    # small shape consistent with the module (C=3 RGB)
    x_small = jax.random.uniform(k1, (2, 3, 16, 16), dtype=jnp.float32)
    out = jax.block_until_ready(normalize_layer(x_small, mean, std))
    ref = _reference(x_small, mean, std)
    assert jnp.allclose(out, ref, atol=1e-6, rtol=1e-5), "mismatch vs reference (small)"

    # larger case exercising the multi-block (grid-split) path
    x_big = jax.random.uniform(k2, (8, 3, 64, 64), dtype=jnp.float32)
    out_b = jax.block_until_ready(normalize_layer(x_big, mean, std))
    ref_b = _reference(x_big, mean, std)
    assert jnp.allclose(out_b, ref_b, atol=1e-6, rtol=1e-5), "mismatch vs reference (big)"

    print("KERNEL_OK")
</pallas_src>

<mosaic_0001>
module attributes {stable_mosaic.version = 11 : i64} {
  func.func @_normalize_kernel(%arg0: i32, %arg1: i32, %arg2: memref<6x256xf32, #tpu.memory_space<vmem>>, %arg3: memref<6x1xf32, #tpu.memory_space<vmem>>, %arg4: memref<6x1xf32, #tpu.memory_space<vmem>>, %arg5: memref<6x256xf32, #tpu.memory_space<vmem>>) attributes {dimension_semantics = [#tpu.dimension_semantics<parallel>, #tpu.dimension_semantics<parallel>], iteration_bounds = array<i64: 1, 1>, scalar_prefetch = 0 : i64, scratch_operands = 0 : i64, tpu.core_type = #tpu.core_type<tc>, window_params = [{transform_indices = @transform_0, window_bounds = array<i64: 6, 256>}, {transform_indices = @transform_1, window_bounds = array<i64: 6, 1>}, {transform_indices = @transform_2, window_bounds = array<i64: 6, 1>}, {transform_indices = @transform_3, window_bounds = array<i64: 6, 256>}]} {
    %c0 = arith.constant 0 : index
    %c0_0 = arith.constant 0 : index
    %0 = vector.load %arg2[%c0, %c0_0] : memref<6x256xf32, #tpu.memory_space<vmem>>, vector<6x256xf32>
    %c0_1 = arith.constant 0 : index
    %c0_2 = arith.constant 0 : index
    %1 = vector.load %arg3[%c0_1, %c0_2] : memref<6x1xf32, #tpu.memory_space<vmem>>, vector<6x1xf32>
    %2 = vector.broadcast %1 : vector<6x1xf32> to vector<6x256xf32>
    %3 = arith.mulf %0, %2 : vector<6x256xf32>
    %c0_3 = arith.constant 0 : index
    %c0_4 = arith.constant 0 : index
    %4 = vector.load %arg4[%c0_3, %c0_4] : memref<6x1xf32, #tpu.memory_space<vmem>>, vector<6x1xf32>
    %5 = vector.broadcast %4 : vector<6x1xf32> to vector<6x256xf32>
    %6 = arith.addf %3, %5 : vector<6x256xf32>
    %c0_5 = arith.constant 0 : index
    %c0_6 = arith.constant 0 : index
    %7 = vector.load %arg5[%c0_5, %c0_6] : memref<6x256xf32, #tpu.memory_space<vmem>>, vector<6x256xf32>
    tpu.vector_store %arg5[%c0_5, %c0_6], %6 {strides = array<i32>} : memref<6x256xf32, #tpu.memory_space<vmem>>, vector<6x256xf32>,
    return
  }
  func.func @transform_0(%arg0: i32, %arg1: i32) -> (i32, i32) {
    %c0_i32 = arith.constant 0 : i32
    return %arg0, %arg1 : i32, i32
  }
  func.func @transform_1(%arg0: i32, %arg1: i32) -> (i32, i32) {
    %c0_i32 = arith.constant 0 : i32
    %c0_i32_0 = arith.constant 0 : i32
    return %arg0, %c0_i32 : i32, i32
  }
  func.func @transform_2(%arg0: i32, %arg1: i32) -> (i32, i32) {
    %c0_i32 = arith.constant 0 : i32
    %c0_i32_0 = arith.constant 0 : i32
    return %arg0, %c0_i32 : i32, i32
  }
  func.func @transform_3(%arg0: i32, %arg1: i32) -> (i32, i32) {
    %c0_i32 = arith.constant 0 : i32
    return %arg0, %arg1 : i32, i32
  }
}

</mosaic_0001>

<bundles_post_ra>
// kernel: tpu_custom_call.1
= control target key start
LH: loop header
LB: loop body
LE: loop exit
PB: predicated region body
PF: predicated region fallthrough
CT: control target
= control target key end

     0   :  { %v76_v1 = vmov 0   ;;  %s122_s0 = inlined_call_operand.vmem [shape: f32[6,256], index: 0, kind: input, shape index: {}]   ;;  %s123_s1 = inlined_call_operand.vmem [shape: f32[6,1], index: 1, kind: input, shape index: {}]   ;;  %s124_s2 = inlined_call_operand.vmem [shape: f32[6,1], index: 2, kind: input, shape index: {}]   ;;  %s125_s3 = inlined_call_operand.hbm [shape: f32[6,256], index: 3, kind: output, shape index: {}]  }
   0x1   :  { %v17_v0 = vld [vmem:[%s123_s1] sm:$0x3f]  ;;  %51 = vset.pattern.permute.xlu0 %v76_v1 }
   0x2   :  { %8 = vsyncpa [#allocation3], 0  ;;  %20 = vperm.xlu0 %51, %v17_v0   ;;  %v25_v2 = vld [vmem:[%s124_s2] sm:$0x3f]  ;;  %v16_v5 = vld [vmem:[%s122_s0 + $0x8] sm:$0x3f] }
   0x3   :  { %v15_v4 = vld [vmem:[%s122_s0] sm:$0x3f]  ;;  %s77_s20 = smov [#allocation2]  }
   0x4   :  { %s41_s1 = sshll.u32 %s77_s20, 4  ;;  %s42_s1 = int_to_ptr.vmem [resolvable:$true] %s41_s1 }
   0x5   :  { %s52_s2 = scalar_lea.vmem %s42_s1, 256  ;;  %p57_p1 = scmp.lt.s32.totalorder %s42_s1, %s42_s1 }
   0x6   :  { %28 = vperm.xlu0 %51, %v25_v2   ;;  %p53_p0 = scmp.ne.s32.totalorder %s42_s1, %s52_s2  ;;  %p58_p2 = scmp.lt.s32.totalorder %s52_s2, %s52_s2 }
   0x8   :  { %p59_p3 = por %p58_p2, %p57_p1 }
   0xa   :  { %p60_p4 = pnand %p59_p3, %p53_p0 }
  0x81   :  { %v21_v3 = vpop.permute.xlu0 %20 }
  0x82   :  { %v23_v6 = vmul.f32 %v21_v3, %v15_v4  ;;  %v24_v7 = vmul.f32 %v21_v3, %v16_v5 }
  0x85   :  { %v29_v8 = vpop.permute.xlu0 %28 }
  0x86   :  { %v31_v9 = vadd.f32 %v29_v8, %v23_v6  ;;  %v32_v10 = vadd.f32 %v29_v8, %v24_v7 }
  0x88   :  { %33 = vst [vmem:[#allocation2] sm:$0x3f] %v31_v9  ;;  %34 = vst [vmem:[#allocation2 + $0x8] sm:$0x3f] %v32_v10 }
  0x89   :  { %63 = shalt.err (!%p60_p4)
}
  0x8a   :  { %s64_s0 = scalar_lea.hbm %s125_s3, 256 }
  0x8b   :  { %p65_p5 = scmp.ne.s32.totalorder %s125_s3, %s64_s0  ;;  %p68_p6 = scmp.lt.u32.totalorder %s64_s0, %s125_s3 }
  0x8d   :  { %p70_p7 = pnand %p68_p6, %p65_p5 }
  0x8f   :  { %73 = shalt.err (!%p70_p7)
}
  0x90   :  { %44 = dma.vmem_to_hbm [thread:$0]  %s42_s1, 256, %s125_s3, [#allocation3]  }
  0x91   :  { %74 = dma.done.wait [#allocation3], 256  }
  0x92   :  { %75 = vsyncadd [#allocation3], 4294967040 }
  0x93   :  { %48 = vsyncpa [#allocation3], 1 }

</bundles_post_ra>
